<compile_context>
chip_gen: v5e
topology: v5e:2x2
jax: 0.10.0
libtpu: 0.0.40
codegen_flags: <defaults>
</compile_context>

<pallas_src>
import math
import functools

import jax
import jax.numpy as jnp
from jax.experimental import pallas as pl
from jax.experimental.pallas import tpu as pltpu


def _hardtanh(v):
    return jnp.clip(v, -1.0, 1.0)


def lstm_model_kernel(x_ref, wi_ref, wh_ref, wo_ref, y_ref,
                      h_sc, c_sc, *, n_hidden, num_layers):
    """One grid step == one timestep of the LSTMModel forward.

    x_ref:  [1, 1, n_input]        (streamed per step)
    wi_ref: [n_input, 4*n_hidden]  (VMEM-resident, constant index_map)
    wh_ref: [n_hidden, 4*n_hidden] (VMEM-resident)
    wo_ref: [n_hidden, n_output]   (VMEM-resident)
    y_ref:  [1, 1, n_output]       (streamed per step)
    h_sc, c_sc: [1, n_hidden] f32 VMEM scratch carried across the grid.
    """
    t = pl.program_id(0)

    @pl.when(t == 0)
    def _():
        # state=None / cell=None in PyTorch == zeros (all Linears bias-free).
        h_sc[...] = jnp.zeros_like(h_sc)
        c_sc[...] = jnp.zeros_like(c_sc)

    x = x_ref[0]          # [1, n_input]
    wi = wi_ref[...]      # [n_input, 4H]
    wh = wh_ref[...]      # [n_hidden, 4H]
    H = n_hidden

    # num_layers applications of the SAME cell with the SAME x (as in PyTorch).
    for _ in range(num_layers):
        h = h_sc[...]
        c = c_sc[...]
        # Two fused gate matmuls instead of eight tiny ones.
        g = (jnp.dot(x, wi, preferred_element_type=jnp.float32)
             + jnp.dot(h, wh, preferred_element_type=jnp.float32))  # [1, 4H]
        f = jax.nn.sigmoid(g[:, 0 * H:1 * H])
        i = jax.nn.sigmoid(g[:, 1 * H:2 * H])
        o = jax.nn.sigmoid(g[:, 2 * H:3 * H])
        u = _hardtanh(g[:, 3 * H:4 * H])

        c_new = f * c + i * u
        h_new = o * _hardtanh(c_new)
        h_sc[...] = h_new
        c_sc[...] = c_new

    # Fused output projection: y_t = h_t @ Wout.
    y = jnp.dot(h_sc[...], wo_ref[...], preferred_element_type=jnp.float32)
    y_ref[...] = y[None].astype(y_ref.dtype)  # [1, 1, n_output]


@functools.partial(jax.jit, static_argnames=("num_layers",))
def lstm_model_forward(xs, wi_packed, wh_packed, w_out, *, num_layers=1):
    """Full LSTMModel.forward.

    xs:        [T, n_input]  (sequence of timesteps; batch==1 as in PyTorch)
    wi_packed: [n_input, 4*n_hidden]
    wh_packed: [n_hidden, 4*n_hidden]
    w_out:     [n_hidden, n_output]
    Returns ys of shape [1, T, n_output] (matching the PyTorch transpose(0,1)).
    """
    T, n_input = xs.shape
    n_hidden = wh_packed.shape[0]
    n_output = w_out.shape[1]

    xs3 = xs.reshape(T, 1, n_input)

    kernel = functools.partial(
        lstm_model_kernel, n_hidden=n_hidden, num_layers=num_layers)

    ys = pl.pallas_call(
        kernel,
        out_shape=jax.ShapeDtypeStruct((T, 1, n_output), jnp.float32),
        grid_spec=pltpu.PrefetchScalarGridSpec(
            num_scalar_prefetch=0,
            grid=(T,),
            in_specs=[
                # Stream one timestep per grid step.
                pl.BlockSpec((1, 1, n_input), lambda t: (t, 0, 0)),
                # Constant index_maps -> weights DMA'd once, VMEM-resident.
                pl.BlockSpec((n_input, 4 * n_hidden), lambda t: (0, 0)),
                pl.BlockSpec((n_hidden, 4 * n_hidden), lambda t: (0, 0)),
                pl.BlockSpec((n_hidden, n_output), lambda t: (0, 0)),
            ],
            out_specs=pl.BlockSpec((1, 1, n_output), lambda t: (t, 0, 0)),
            scratch_shapes=[
                pltpu.VMEM((1, n_hidden), jnp.float32),  # h carry
                pltpu.VMEM((1, n_hidden), jnp.float32),  # c carry
            ],
        ),
        compiler_params=pltpu.CompilerParams(
            # Timestep axis carries the recurrence -> must stay sequential.
            dimension_semantics=("arbitrary",),
            vmem_limit_bytes=64 << 20,
        ),
    )(xs3, wi_packed, wh_packed, w_out)

    # PyTorch: stack over time -> [T, 1, n_output], then transpose(0, 1).
    return jnp.transpose(ys, (1, 0, 2))


def init_params(key, n_input, n_hidden, n_output):
    """PyTorch-layout parameters ([out, in] per nn.Linear, bias-free)."""
    stdv = 1.0 / math.sqrt(n_hidden)
    names_in = ["in_f", "in_i", "in_o", "in_u"]
    names_h = ["h_f", "h_i", "h_o", "h_u"]
    keys = jax.random.split(key, 9)
    params = {}
    for k, name in zip(keys[:4], names_in):
        params[name] = jax.random.uniform(
            k, (n_hidden, n_input), jnp.float32, minval=-stdv, maxval=stdv)
    for k, name in zip(keys[4:8], names_h):
        params[name] = jax.random.uniform(
            k, (n_hidden, n_hidden), jnp.float32, minval=-stdv, maxval=stdv)
    # Output projection is a default-initialized nn.Linear in PyTorch; any
    # deterministic init is fine for this self-contained test.
    params["out"] = jax.random.uniform(
        keys[8], (n_output, n_hidden), jnp.float32,
        minval=-1.0 / math.sqrt(n_hidden), maxval=1.0 / math.sqrt(n_hidden))
    return params


def pack_params(params):
    """One-time packing (done at init, NOT per call): transpose to [in, out]
    and concatenate the four gates along the output axis."""
    wi_packed = jnp.concatenate(
        [params["in_f"].T, params["in_i"].T, params["in_o"].T, params["in_u"].T],
        axis=1)  # [n_input, 4*n_hidden]
    wh_packed = jnp.concatenate(
        [params["h_f"].T, params["h_i"].T, params["h_o"].T, params["h_u"].T],
        axis=1)  # [n_hidden, 4*n_hidden]
    w_out = params["out"].T  # [n_hidden, n_output]
    return wi_packed, wh_packed, w_out


def _reference(xs, params, num_layers=1):
    """Pure-JAX mirror of LSTMModel.forward (including the None branches)."""
    T = xs.shape[0]
    h = None
    c = None
    hs = []
    for t in range(T):
        x = xs[t:t + 1]  # [1, n_input]
        for _ in range(num_layers):
            if h is None:
                f = jax.nn.sigmoid(x @ params["in_f"].T)
                i = jax.nn.sigmoid(x @ params["in_i"].T)
                o = jax.nn.sigmoid(x @ params["in_o"].T)
                u = _hardtanh(x @ params["in_u"].T)
            else:
                f = jax.nn.sigmoid(x @ params["in_f"].T + h @ params["h_f"].T)
                i = jax.nn.sigmoid(x @ params["in_i"].T + h @ params["h_i"].T)
                o = jax.nn.sigmoid(x @ params["in_o"].T + h @ params["h_o"].T)
                u = _hardtanh(x @ params["in_u"].T + h @ params["h_u"].T)
            c = i * u if c is None else f * c + i * u
            h = o * _hardtanh(c)
        hs.append(h)
    h_seq = jnp.stack(hs)                 # [T, 1, n_hidden]
    ys = h_seq @ params["out"].T          # [T, 1, n_output]
    return jnp.transpose(ys, (1, 0, 2))   # [1, T, n_output]


if __name__ == "__main__":
    T, n_input, n_hidden, n_output = 8, 16, 32, 8
    num_layers = 1

    key = jax.random.PRNGKey(0)
    k_param, k_x = jax.random.split(key)

    params = init_params(k_param, n_input, n_hidden, n_output)
    wi_packed, wh_packed, w_out = pack_params(params)   # packed once
    xs = jax.random.normal(k_x, (T, n_input), jnp.float32)

    ys = lstm_model_forward(xs, wi_packed, wh_packed, w_out,
                            num_layers=num_layers)
    jax.block_until_ready(ys)

    ys_ref = _reference(xs, params, num_layers=num_layers)
    assert ys.shape == (1, T, n_output), f"bad output shape {ys.shape}"
    assert jnp.allclose(ys, ys_ref, atol=1e-5, rtol=1e-5), "output mismatch"

    print("KERNEL_OK")
</pallas_src>

<mosaic_0001>
module attributes {stable_mosaic.version = 11 : i64} {
  func.func @lstm_model_kernel(%arg0: i32, %arg1: memref<1x1x16xf32, #tpu.memory_space<vmem>>, %arg2: memref<16x128xf32, #tpu.memory_space<vmem>>, %arg3: memref<32x128xf32, #tpu.memory_space<vmem>>, %arg4: memref<32x8xf32, #tpu.memory_space<vmem>>, %arg5: memref<1x1x8xf32, #tpu.memory_space<vmem>>, %arg6: memref<1x32xf32, #tpu.memory_space<vmem>>, %arg7: memref<1x32xf32, #tpu.memory_space<vmem>>) attributes {dimension_semantics = [#tpu.dimension_semantics<arbitrary>], iteration_bounds = array<i64: 8>, scalar_prefetch = 0 : i64, scratch_operands = 2 : i64, tpu.core_type = #tpu.core_type<tc>, window_params = [{transform_indices = @transform_0, window_bounds = array<i64: 1, 1, 16>}, {pipeline_mode = #tpu.pipeline_mode<synchronous>, transform_indices = @transform_1, window_bounds = array<i64: 16, 128>}, {pipeline_mode = #tpu.pipeline_mode<synchronous>, transform_indices = @transform_2, window_bounds = array<i64: 32, 128>}, {pipeline_mode = #tpu.pipeline_mode<synchronous>, transform_indices = @transform_3, window_bounds = array<i64: 32, 8>}, {transform_indices = @transform_4, window_bounds = array<i64: 1, 1, 8>}]} {
    %c0_i32 = arith.constant 0 : i32
    %0 = arith.cmpi eq, %arg0, %c0_i32 : i32
    %1 = arith.extui %0 : i1 to i32
    %c0_i32_0 = arith.constant 0 : i32
    %2 = arith.cmpi ne, %1, %c0_i32_0 : i32
    scf.if %2 {
      %cst_31 = arith.constant 0.000000e+00 : f32
      %50 = vector.broadcast %cst_31 : f32 to vector<1x32xf32>
      %c0_32 = arith.constant 0 : index
      %c0_33 = arith.constant 0 : index
      %51 = vector.load %arg6[%c0_32, %c0_33] : memref<1x32xf32, #tpu.memory_space<vmem>>, vector<1x32xf32>
      tpu.vector_store %arg6[%c0_32, %c0_33], %50 {strides = array<i32>} : memref<1x32xf32, #tpu.memory_space<vmem>>, vector<1x32xf32>,
      %cst_34 = arith.constant 0.000000e+00 : f32
      %52 = vector.broadcast %cst_34 : f32 to vector<1x32xf32>
      %c0_35 = arith.constant 0 : index
      %c0_36 = arith.constant 0 : index
      %53 = vector.load %arg7[%c0_35, %c0_36] : memref<1x32xf32, #tpu.memory_space<vmem>>, vector<1x32xf32>
      tpu.vector_store %arg7[%c0_35, %c0_36], %52 {strides = array<i32>} : memref<1x32xf32, #tpu.memory_space<vmem>>, vector<1x32xf32>,
    } else {
    }
    %c0 = arith.constant 0 : index
    %c0_1 = arith.constant 0 : index
    %c0_2 = arith.constant 0 : index
    %3 = vector.load %arg1[%c0, %c0_1, %c0_2] : memref<1x1x16xf32, #tpu.memory_space<vmem>>, vector<1x1x16xf32>
    %4 = vector.shape_cast %3 : vector<1x1x16xf32> to vector<1x16xf32>
    %c0_3 = arith.constant 0 : index
    %c0_4 = arith.constant 0 : index
    %5 = vector.load %arg2[%c0_3, %c0_4] : memref<16x128xf32, #tpu.memory_space<vmem>>, vector<16x128xf32>
    %c0_5 = arith.constant 0 : index
    %c0_6 = arith.constant 0 : index
    %6 = vector.load %arg3[%c0_5, %c0_6] : memref<32x128xf32, #tpu.memory_space<vmem>>, vector<32x128xf32>
    %c0_7 = arith.constant 0 : index
    %c0_8 = arith.constant 0 : index
    %7 = vector.load %arg6[%c0_7, %c0_8] : memref<1x32xf32, #tpu.memory_space<vmem>>, vector<1x32xf32>
    %c0_9 = arith.constant 0 : index
    %c0_10 = arith.constant 0 : index
    %8 = vector.load %arg7[%c0_9, %c0_10] : memref<1x32xf32, #tpu.memory_space<vmem>>, vector<1x32xf32>
    %cst = arith.constant dense<0.000000e+00> : vector<1x128xf32>
    %9 = tpu.matmul %4, %5, %cst {dimension_numbers = #tpu.dot_dimension_numbers<[1], [0], [0], [1], [0, 0, 1, 1], [], []>} : vector<1x16xf32>, vector<16x128xf32>, vector<1x128xf32> -> vector<1x128xf32>
    %cst_11 = arith.constant dense<0.000000e+00> : vector<1x128xf32>
    %10 = tpu.matmul %7, %6, %cst_11 {dimension_numbers = #tpu.dot_dimension_numbers<[1], [0], [0], [1], [0, 0, 1, 1], [], []>} : vector<1x32xf32>, vector<32x128xf32>, vector<1x128xf32> -> vector<1x128xf32>
    %11 = arith.addf %9, %10 : vector<1x128xf32>
    %12 = vector.extract_strided_slice %11 {offsets = [0, 0], sizes = [1, 32], strides = [1, 1]} : vector<1x128xf32> to vector<1x32xf32>
    %13 = arith.negf %12 : vector<1x32xf32>
    %14 = math.exp %13 : vector<1x32xf32>
    %cst_12 = arith.constant 1.000000e+00 : f32
    %15 = vector.broadcast %cst_12 : f32 to vector<1x32xf32>
    %16 = arith.addf %15, %14 : vector<1x32xf32>
    %17 = arith.divf %15, %16 : vector<1x32xf32>
    %18 = vector.extract_strided_slice %11 {offsets = [0, 32], sizes = [1, 32], strides = [1, 1]} : vector<1x128xf32> to vector<1x32xf32>
    %19 = arith.negf %18 : vector<1x32xf32>
    %20 = math.exp %19 : vector<1x32xf32>
    %cst_13 = arith.constant 1.000000e+00 : f32
    %21 = vector.broadcast %cst_13 : f32 to vector<1x32xf32>
    %22 = arith.addf %21, %20 : vector<1x32xf32>
    %23 = arith.divf %21, %22 : vector<1x32xf32>
    %24 = vector.extract_strided_slice %11 {offsets = [0, 64], sizes = [1, 32], strides = [1, 1]} : vector<1x128xf32> to vector<1x32xf32>
    %25 = arith.negf %24 : vector<1x32xf32>
    %26 = math.exp %25 : vector<1x32xf32>
    %cst_14 = arith.constant 1.000000e+00 : f32
    %27 = vector.broadcast %cst_14 : f32 to vector<1x32xf32>
    %28 = arith.addf %27, %26 : vector<1x32xf32>
    %29 = arith.divf %27, %28 : vector<1x32xf32>
    %30 = vector.extract_strided_slice %11 {offsets = [0, 96], sizes = [1, 32], strides = [1, 1]} : vector<1x128xf32> to vector<1x32xf32>
    %cst_15 = arith.constant -1.000000e+00 : f32
    %cst_16 = arith.constant 1.000000e+00 : f32
    %31 = vector.broadcast %cst_15 : f32 to vector<1x32xf32>
    %32 = arith.maximumf %31, %30 : vector<1x32xf32>
    %33 = vector.broadcast %cst_16 : f32 to vector<1x32xf32>
    %34 = arith.minimumf %33, %32 : vector<1x32xf32>
    %35 = arith.mulf %17, %8 : vector<1x32xf32>
    %36 = arith.mulf %23, %34 : vector<1x32xf32>
    %37 = arith.addf %35, %36 : vector<1x32xf32>
    %cst_17 = arith.constant -1.000000e+00 : f32
    %cst_18 = arith.constant 1.000000e+00 : f32
    %38 = vector.broadcast %cst_17 : f32 to vector<1x32xf32>
    %39 = arith.maximumf %38, %37 : vector<1x32xf32>
    %40 = vector.broadcast %cst_18 : f32 to vector<1x32xf32>
    %41 = arith.minimumf %40, %39 : vector<1x32xf32>
    %42 = arith.mulf %29, %41 : vector<1x32xf32>
    %c0_19 = arith.constant 0 : index
    %c0_20 = arith.constant 0 : index
    %43 = vector.load %arg6[%c0_19, %c0_20] : memref<1x32xf32, #tpu.memory_space<vmem>>, vector<1x32xf32>
    tpu.vector_store %arg6[%c0_19, %c0_20], %42 {strides = array<i32>} : memref<1x32xf32, #tpu.memory_space<vmem>>, vector<1x32xf32>,
    %c0_21 = arith.constant 0 : index
    %c0_22 = arith.constant 0 : index
    %44 = vector.load %arg7[%c0_21, %c0_22] : memref<1x32xf32, #tpu.memory_space<vmem>>, vector<1x32xf32>
    tpu.vector_store %arg7[%c0_21, %c0_22], %37 {strides = array<i32>} : memref<1x32xf32, #tpu.memory_space<vmem>>, vector<1x32xf32>,
    %c0_23 = arith.constant 0 : index
    %c0_24 = arith.constant 0 : index
    %45 = vector.load %arg6[%c0_23, %c0_24] : memref<1x32xf32, #tpu.memory_space<vmem>>, vector<1x32xf32>
    %c0_25 = arith.constant 0 : index
    %c0_26 = arith.constant 0 : index
    %46 = vector.load %arg4[%c0_25, %c0_26] : memref<32x8xf32, #tpu.memory_space<vmem>>, vector<32x8xf32>
    %cst_27 = arith.constant dense<0.000000e+00> : vector<1x8xf32>
    %47 = tpu.matmul %45, %46, %cst_27 {dimension_numbers = #tpu.dot_dimension_numbers<[1], [0], [0], [1], [0, 0, 1, 1], [], []>} : vector<1x32xf32>, vector<32x8xf32>, vector<1x8xf32> -> vector<1x8xf32>
    %48 = vector.shape_cast %47 : vector<1x8xf32> to vector<1x1x8xf32>
    %c0_28 = arith.constant 0 : index
    %c0_29 = arith.constant 0 : index
    %c0_30 = arith.constant 0 : index
    %49 = vector.load %arg5[%c0_28, %c0_29, %c0_30] : memref<1x1x8xf32, #tpu.memory_space<vmem>>, vector<1x1x8xf32>
    tpu.vector_store %arg5[%c0_28, %c0_29, %c0_30], %48 {strides = array<i32>} : memref<1x1x8xf32, #tpu.memory_space<vmem>>, vector<1x1x8xf32>,
    return
  }
  func.func @transform_0(%arg0: i32) -> (i32, i32, i32) {
    %c0_i32 = arith.constant 0 : i32
    %c0_i32_0 = arith.constant 0 : i32
    %c0_i32_1 = arith.constant 0 : i32
    return %arg0, %c0_i32, %c0_i32_0 : i32, i32, i32
  }
  func.func @transform_1(%arg0: i32) -> (i32, i32) {
    %c0_i32 = arith.constant 0 : i32
    %c0_i32_0 = arith.constant 0 : i32
    %c0_i32_1 = arith.constant 0 : i32
    return %c0_i32, %c0_i32_0 : i32, i32
  }
  func.func @transform_2(%arg0: i32) -> (i32, i32) {
    %c0_i32 = arith.constant 0 : i32
    %c0_i32_0 = arith.constant 0 : i32
    %c0_i32_1 = arith.constant 0 : i32
    return %c0_i32, %c0_i32_0 : i32, i32
  }
  func.func @transform_3(%arg0: i32) -> (i32, i32) {
    %c0_i32 = arith.constant 0 : i32
    %c0_i32_0 = arith.constant 0 : i32
    %c0_i32_1 = arith.constant 0 : i32
    return %c0_i32, %c0_i32_0 : i32, i32
  }
  func.func @transform_4(%arg0: i32) -> (i32, i32, i32) {
    %c0_i32 = arith.constant 0 : i32
    %c0_i32_0 = arith.constant 0 : i32
    %c0_i32_1 = arith.constant 0 : i32
    return %arg0, %c0_i32, %c0_i32_0 : i32, i32, i32
  }
}

</mosaic_0001>

<bundles_post_ra>
// kernel: lstm_model_forward.1
= control target key start
LH: loop header
LB: loop body
LE: loop exit
PB: predicated region body
PF: predicated region fallthrough
CT: control target
= control target key end

     0   :  { %9 = vsyncpa [#allocation5], 0  ;;  %s763_s0 = inlined_call_operand.vmem [shape: f32[8,1,16], index: 0, kind: input, shape index: {}]   ;;  %s764_s1 = inlined_call_operand.hbm [shape: f32[16,128], index: 1, kind: input, shape index: {}]   ;;  %s765_s2 = inlined_call_operand.vmem [shape: f32[32,128], index: 2, kind: input, shape index: {}]   ;;  %s766_s3 = inlined_call_operand.vmem [shape: f32[32,8], index: 3, kind: input, shape index: {}]   ;;  %s767_s4 = inlined_call_operand.hbm [shape: f32[8,1,8], index: 4, kind: output, shape index: {}]  }
   0x1   :  { %10 = vsyncpa [#allocation6], 0 }
   0x2   :  { %12 = vsyncpa [#allocation6 + $0x1], 0  ;;  %s626_s15 = smov 0   ;;  %s628_s16 = smov 0  }
   0x3   :  { %s630_s17 = smov 0   ;;  %s632_s18 = smov 0  }
   0x4 LB: > { %s647_s19 = sadd.s32 4294967295, %s593_s18   ;;  %s423_s20 = sadd.s32 4294967294, %s593_s18   ;;  %s593_s18 = sphi %s632_s18, %s773_s18   ;;  %s589_s17 = sphi %s630_s17, %s772_s17   ;;  %s585_s16 = sphi %s628_s16, %s771_s16   ;;  %s581_s15 = sphi %s626_s15, %s770_s15  }
   0x5   : > { %s651_s21 = sadd.s32 1, %s593_s18   ;;  %s114_s22 = sadd.s32 1, %s589_s17 }
   0x6   : > { %s111_s23 = ssub.s32 %s593_s18, %s651_s21  ;;  %p124_p0 = scmp.ne.s32.totalorder %s589_s17, %s585_s16 }
   0x7   : > { %p112_p1 = scmp.eq.s32.totalorder %s111_s23, 0  ;;  %p125_p2 = scmp.eq.s32.totalorder %s647_s19, 7 }
   0x8   : > { %p130_p3 = scmp.ne.s32.totalorder %s585_s16, %s581_s15  ;;  %p131_p4 = scmp.eq.s32.totalorder %s423_s20, 7 }
   0x9   : > { %s662_s24 = scalar_select %p112_p1, %s589_s17, %s114_s22  }
   0xa   : > { %p664_p5 = por %p125_p2, %p124_p0  ;;  %p668_p6 = por %p131_p4, %p130_p3 }
   0xb   : > { %p424_p7 = scmp.ge.s32.totalorder %s593_s18, 1  ;;  %p138_p8 = scmp.lt.s32.totalorder %s593_s18, 9 }
   0xc   : > { %p425_p9 = scmp.ne.s32.totalorder %s647_s19, 0  ;;  %p452_p10 = scmp.eq.s32.totalorder %s647_s19, 0 }
   0xd   : > { %p139_p11 = pnand %p424_p7, %p138_p8  ;;  %s149_s29 = sshll.u32 %s764_s1, 4  ;;  %s150_s29 = int_to_ptr.hbm [resolvable:$true] %s149_s29 }
   0xe   : > { %s595_s30 = smov [#allocation4]   ;;  %s596_s6 = smov 128  }
   0xf   : > { %p444_p12 = pneg %p139_p11  ;;  %s151_s5 = sshll.u32 %s595_s30, 4  ;;  %s152_s5 = int_to_ptr.vmem [resolvable:$true] %s151_s5 }
  0x10   : > { %s597_s7 = smov 8   ;;  %179 = sbr.rel (%p139_p11) target bundleno = 780 (0x30c), region = 36 }
  0x11   : > { %p445_p13 = pnand %p452_p10, %p444_p12 }
  0x13   : > { %447 = dma.hbm_to_vmem [thread:$0]  (!%p445_p13), %s150_s29, 256, %s152_s5, [#allocation5], %s596_s6, %s596_s6, %s597_s7  }
  0x15   : > { %572 = dma.done.wait (%p452_p10), [#allocation5], 256  }
  0x16   : > { %574 = vsyncadd (%p452_p10), [#allocation5], 4294967040  ;;  %s201_s8 = sand.u32 1, %s585_s16   ;;  %p203_p0 = scmp.lt.s32.totalorder %s647_s19, 7 }
  0x17   : > { %s693_s13 = scalar_lea.vmem [#allocation7], %s201_s8  ;;  %209 = sbr.rel (%p425_p9) target bundleno = 31 (0x1f), region = 44 }
  0x18   : > { %s204_s9 = scalar_select %p203_p0, %s647_s19, 7 }
  0x1a   : > { %s205_s12 = scalar_lea.vmem %s763_s0, %s204_s9 }
  0x1c   : > { %vm210_vm0 = vcmask 253952   ;;  %v598_v0 = vmov 0.0  }
  0x1d   : > { %211 = vst.msk [vmem:[#allocation2] sm:$0x1] %vm210_vm0, %v598_v0 }
  0x1e   : > { %212 = vst.msk [vmem:[#allocation3] sm:$0x1] %vm210_vm0, %v598_v0 }
  0x1f PF: > { %v219_v1 = vld [vmem:[%s765_s2 + $0x18] sm:$0xff]  ;;  %v218_v2 = vld [vmem:[%s765_s2 + $0x10] sm:$0xff]  ;;  %v214_v4 = vld [vmem:[#allocation4] sm:$0xff]  ;;  %vm246_vm1 = vcmask 130048   ;;  %vm222_vm2 = vcmask 261120   ;;  %s599_s5 = smov 64   ;;  %s355_s28 = scalar_lea.hbm %s767_s4, %s647_s19 }
  0x20   : > { %238 = vmatpush.msra.mxu0 %v219_v1  ;;  %v215_v3 = vld [vmem:[#allocation4 + $0x8] sm:$0xff]  ;;  %v213_v6 = vld [vmem:[%s205_s12] sm:$0x1]  ;;  %s600_s6 = smov 96   ;;  %vm313_vm7 = vcmask 253952   ;;  %v320_v35 = vld [vmem:[%s766_s3 + $0x18] sm:$0xff] }
  0x21   : > { %v217_v5 = vld [vmem:[%s765_s2 + $0x8] sm:$0xff]  ;;  %264 = vmatpush.msra.mxu1 %v215_v3  ;;  %v216_v7 = vld [vmem:[%s765_s2] sm:$0xff]  ;;  %v319_v36 = vld [vmem:[%s766_s3 + $0x10] sm:$0xff]  ;;  %336 = vmatpush.msra.mxu2 %v320_v35  ;;  %s357_s29 = sshll.u32 %s693_s13, 4  ;;  %s359_s30 = sshll.u32 %s355_s28, 4  ;;  %vm344_vm8 = vcmask 57344   ;;  %s358_s29 = int_to_ptr.vmem [resolvable:$true] %s357_s29  ;;  %s360_s30 = int_to_ptr.hbm [resolvable:$true] %s359_s30 }
  0x22   : > { %239 = vmatpush.msra.mxu0 %v218_v2  ;;  %v318_v37 = vld [vmem:[%s766_s3 + $0x8] sm:$0xff]  ;;  %v317_v38 = vld [vmem:[%s766_s3] sm:$0xff]  ;;  %s547_s19 = scalar_lea.hbm %s767_s4, 8 }
  0x23   : > { %265 = vmatpush.msra.mxu1 %v214_v4  ;;  %337 = vmatpush.msra.mxu2 %v319_v36 }
  0x24   : > { %240 = vmatpush.msra.mxu0 %v217_v5  ;;  %v220_v8 = vld [vmem:[#allocation2] sm:$0x1]  ;;  %431 = vmatmul.msk.f32.vlgmr.msra.gmra.mxu1 %vm246_vm1, %v213_v6 }
  0x25   : > { %v221_v28 = vld [vmem:[#allocation3] sm:$0x1]  ;;  %338 = vmatpush.msra.mxu2 %v318_v37 }
  0x26   : > { %241 = vmatpush.msra.mxu0 %v216_v7 }
  0x27   : > { %430 = vmatmul.msk.f32.vlgmr.msra.gmra.mxu0 %vm222_vm2, %v220_v8  ;;  %339 = vmatpush.msra.mxu2 %v317_v38 }
  0xa1   : > { %v267_v9 = vpop.f32.mrf.mxu1 }
  0xa4   : > { %v243_v10 = vpop.f32.mrf.mxu0 }
  0xa5   : > { %v268_v11 = vadd.f32 %v267_v9, %v243_v10 }
  0xa7   : > { %v433_v12 = vclamps-f32 %v268_v11, 1.0  ;;  %v432_v13 = vmul.f32 -1.442695, %v268_v11 }
  0xa9   : > { %293 = vrot.lane.b32.xlu0 %v433_v12, %s599_s5  ;;  %493 = vpow2.f32 %v432_v13 }
  0xaf   : > { %v494_v14 = vpop.eup %493 }
  0xb0   : > { %v273_v15 = vadd.f32 1.0, %v494_v14 }
  0xb2   : > { %495 = vrcp.f32 %v273_v15  ;;  %v285_v21 = vand.u32 2147483648, %v273_v15  ;;  %vm279_vm4 = vweird.f32 %v273_v15  ;;  %v283_v22 = vand.u32 2147483647, %v273_v15 }
  0xb4   : > { %v286_v24 = vor.u32 1.1754944e-38, %v285_v21  ;;  %vm284_vm6 = vcmp.eq.f32.partialorder %v283_v22, 8.507059e+37 }
  0xb8   : > { %v496_v16 = vpop.eup %495 }
  0xb9   : > { %v275_v17 = vmul.f32 %v496_v16, %v273_v15  ;;  %vm280_vm3 = vweird.f32 %v496_v16 }
  0xba   : > { %vm281_vm5 = vmor %vm279_vm4, %vm280_vm3 }
  0xbb   : > { %v276_v18 = vsub.f32 1.0, %v275_v17 }
  0xbd   : > { %v277_v19 = vmul.f32 %v496_v16, %v276_v18 }
  0xbf   : > { %v278_v20 = vadd.f32 %v496_v16, %v277_v19 }
  0xc1   : > { %v282_v23 = vsel %vm281_vm5, %v496_v16, %v278_v20 }
  0xc2   : > { %v287_v26 = vsel %vm284_vm6, %v286_v24, %v282_v23 }
  0xc3   : > { %v291_v29 = vmul.f32 %v287_v26, %v221_v28 }
 0x11b   : > { %v294_v25 = vpop.permute.xlu0 %293 }
 0x11c   : > { %v296_v27 = vmul.f32 %v294_v25, %v287_v26 }
 0x11e   : > { %298 = vrot.lane.b32.xlu0 %v296_v27, %s600_s6  ;;  %s541_s6 = sshra.s32 %s360_s30, 4  ;;  %s542_s6 = int_to_ptr.hbm [resolvable:$true] %s541_s6 }
 0x11f   : > { %s543_s7 = scalar_lea.hbm %s542_s6, 1  ;;  %p548_p4 = scmp.lt.s32.totalorder %s542_s6, %s767_s4 }
 0x120   : > { %p544_p1 = scmp.ne.s32.totalorder %s542_s6, %s543_s7  ;;  %p549_p7 = scmp.lt.s32.totalorder %s547_s19, %s543_s7 }
 0x122   : > { %p545_p2 = pnand %p544_p1, %p664_p5  ;;  %p550_p8 = por %p549_p7, %p548_p4 }
 0x124   : > { %p546_p3 = pneg %p545_p2 }
 0x126   : > { %p551_p9 = pnand %p550_p8, %p546_p3 }
 0x190   : > { %v299_v30 = vpop.permute.xlu0 %298 }
 0x191   : > { %v301_v31 = vadd.f32 %v299_v30, %v291_v29 }
 0x193   : > { %v434_v32 = vclamps-f32 %v301_v31, 1.0  ;;  %315 = vst.msk [vmem:[#allocation3] sm:$0x1] %vm313_vm7, %v301_v31 }
 0x195   : > { %305 = vrot.lane.b32.xlu1 %v434_v32, %s599_s5 }
 0x207   : > { %v306_v33 = vpop.permute.xlu1 %305 }
 0x208   : > { %v308_v34 = vmul.f32 %v306_v33, %v287_v26 }
 0x20a   : > { %310 = vrot.lane.b32.xlu1 %v308_v34, %s599_s5  ;;  %s347_s5 = scalar_lea.sflag [#allocation6], %s201_s8 }
 0x27c   : > { %v311_v39 = vpop.permute.xlu1 %310 }
 0x27d   : > { %314 = vst.msk [vmem:[#allocation2] sm:$0x1] %vm313_vm7, %v311_v39 }
 0x284   : > { %v316_v40 = vld [vmem:[#allocation2] sm:$0x1] }
 0x285   : > { %435 = vmatmul.msk.f32.vlgmr.msra.gmra.mxu2 %vm222_vm2, %v316_v40 }
 0x308   : > { %v341_v41 = vpop.f32.mrf.mxu2 }
 0x309   : > { %345 = vst.msk [vmem:[%s693_s13] sm:$0x1] %vm344_vm8, %v341_v41 }
 0x30a   : > { %554 = shalt.err (!%p551_p9)
}
 0x30b   : > { %442 = dma.vmem_to_hbm [thread:$0]  (%p664_p5), %s358_s29, 16, %s360_s30, %s347_s5  }
 0x30c PF: > { %p454_p10 = scmp.ge.s32.totalorder %s593_s18, 2  ;;  %s371_s8 = sand.u32 1, %s581_s15  }
 0x30d   : > { %s372_s13 = scalar_lea.sflag [#allocation6], %s371_s8 }
 0x30e   : > { %p449_p11 = pnand %p454_p10, %p668_p6 }
 0x310   : > { %p450_p12 = pneg %p449_p11 }
 0x312   : > { %576 = dma.done.wait (%p450_p12), %s372_s13, 16  }
 0x313   : > { %578 = vsyncadd (%p450_p12), %s372_s13, 4294967280  ;;  %p15_p13 = scmp.ge.s32.totalorder %s651_s21, 10   ;;  %s770_s15 = smov %s585_s16 }
 0x314   : > { %s771_s16 = smov %s589_s17  ;;  %s772_s17 = smov %s662_s24 }
 0x315   : > { %s773_s18 = smov %s651_s21  ;;  %17 = sbr.rel (!%p15_p13) target bundleno = 4 (0x4), region = 80 }
 0x31a   :  { %377 = vsyncpa [#allocation5], 1 }
 0x31b   :  { %379 = vsyncpa [#allocation5 + $0x1], 1 }
 0x31c   :  { %380 = vsyncpa [#allocation6], 1 }
 0x31d   :  { %382 = vsyncpa [#allocation6 + $0x1], 1 }

</bundles_post_ra>
